<compile_context>
chip_gen: v6e
topology: v6e:2x2x1
jax: 0.10.0
libtpu: 0.0.40
codegen_flags: <defaults>
</compile_context>

<pallas_src>
import jax
import jax.numpy as jnp
from jax.experimental import pallas as pl
from jax.experimental.pallas import tpu as pltpu


def _focus_kernel(x_ref, w_ref, bias_ref, o_ref):
    # (C_out, K) @ (K, TM) on the MXU.  BN scale is pre-folded into W, so only
    # the per-channel bias add + SiLU remain.  Accumulate/activate in f32
    # regardless of the I/O dtype (v5e has no bf16 VPU/EUP).
    acc = jnp.dot(w_ref[...], x_ref[...], preferred_element_type=jnp.float32)
    y = acc + bias_ref[...]                         # (C_out, TM) + (C_out, 1)
    # SiLU with one transcendental: sigmoid(y) == 0.5 * (tanh(y/2) + 1).
    silu = 0.5 * y * (jnp.tanh(0.5 * y) + 1.0)
    o_ref[...] = silu.astype(o_ref.dtype)


def _round_up(a, b):
    return ((a + b - 1) // b) * b


def _choose_tile(m, n_batch, tm_max):
    """Pick the spatial (lane) tile size.

    Priorities (per perf review):
      * big tiles so the ~0.35us fixed per-grid-step overhead is amortised;
      * no jnp.pad / output slice: prefer tiles that divide m exactly;
      * >= 2 grid steps when possible so both v7x TensorCores get work.
    Returns (tm, m_pad).
    """
    if m <= tm_max:
        # One full-m block: no 128-divisibility constraint (block == full dim),
        # no padding, no output slice.
        if n_batch == 1 and m >= 256 and m % 256 == 0:
            return m // 2, m            # split once so both TCs stay busy
        return m, m
    # Tiled path: the tile must be a multiple of 128.  Look for a 128-multiple
    # divisor of ceil(m/128)*128 so padding is at most 127 lanes.
    m128 = _round_up(m, 128)
    q = m128 // 128
    d_max = max(tm_max // 128, 1)
    best_d = 1
    for d in range(min(d_max, q), 0, -1):
        if q % d == 0:
            best_d = d
            break
    tm = 128 * best_d
    if tm >= 1024:
        return tm, m128
    # No decent divisor (e.g. q prime): fall back to max-size tiles + padding.
    tm = 128 * d_max
    return tm, _round_up(m, tm)


def focus_forward(x_nchw, conv_w, gamma, beta, run_mean, run_var,
                  *, eps=1e-5, tm_max=8192):
    """Focus forward: space-to-depth + 1x1 conv + BN(eval) + SiLU.

    I/O stays in x's dtype (pass bf16 inputs for ~2x less HBM traffic); the
    matmul accumulates in f32 and bias+SiLU run in f32.  On v7x, tm_max=16384
    is also safe (~6 MiB double-buffered VMEM).
    """
    n, c, h, w = x_nchw.shape
    assert h % 2 == 0 and w % 2 == 0
    c_out = conv_w.shape[0]
    k = 4 * c
    h2, w2 = h // 2, w // 2
    m = h2 * w2
    dt = x_nchw.dtype

    # --- conv_split (fixed permutation weights) == space-to-depth -----------
    # out channel index = (kh*2 + kw)*C_in + c  (matches the PyTorch table).
    # Channels-first (K, M) layout so the kernel output is directly NCHW.
    # TODO(synk): fuse this space-to-depth into the kernel input DMA.  The kh
    # pickup is row-granularity (DMA-friendly), but the kw pickup is an
    # element-granularity even/odd lane deinterleave with no robust Mosaic
    # lowering path; the selection-matmul alternative is MXU-weight-load bound
    # at realistic W, so one XLA transpose pass over x remains.
    x6 = x_nchw.reshape(n, c, h2, 2, w2, 2)           # (n, c, h2, kh, w2, kw)
    x6 = jnp.transpose(x6, (0, 3, 5, 1, 2, 4))        # (n, kh, kw, c, h2, w2)
    x_s2d = x6.reshape(n, k, m)                       # (n, K, M)

    # --- fold BN (eval mode) into the 1x1 conv weight ------------------------
    scale = gamma / jnp.sqrt(run_var + eps)                       # (C_out,)
    bias = (beta - run_mean * scale).astype(jnp.float32)          # (C_out,)
    w_mat = (conv_w.reshape(c_out, k).astype(jnp.float32)
             * scale[:, None]).astype(dt)                         # (C_out, K)

    # --- spatial (lane) tiling ------------------------------------------------
    tm, m_pad = _choose_tile(m, n, tm_max)
    if m_pad != m:                                    # rare fallback only
        x_s2d = jnp.pad(x_s2d, ((0, 0), (0, 0), (0, m_pad - m)))
    grid_m = m_pad // tm

    itemsize = jnp.dtype(dt).itemsize
    cost = pl.CostEstimate(
        flops=2 * n * m_pad * k * c_out,
        transcendentals=n * m_pad * c_out,            # one tanh per output elem
        bytes_accessed=(n * m_pad * (k + c_out) + c_out * (k + 1)) * itemsize,
    )

    out = pl.pallas_call(
        _focus_kernel,
        out_shape=jax.ShapeDtypeStruct((n, c_out, m_pad), dt),
        grid_spec=pltpu.PrefetchScalarGridSpec(
            num_scalar_prefetch=0,
            grid=(n, grid_m),
            in_specs=[
                pl.BlockSpec((None, k, tm), lambda b, i: (b, 0, i)),
                pl.BlockSpec((c_out, k), lambda b, i: (0, 0)),   # resident W
                pl.BlockSpec((c_out, 1), lambda b, i: (0, 0)),   # resident bias
            ],
            out_specs=pl.BlockSpec((None, c_out, tm), lambda b, i: (b, 0, i)),
        ),
        compiler_params=pltpu.CompilerParams(
            dimension_semantics=("parallel", "parallel")),
        cost_estimate=cost,
    )(x_s2d, w_mat, bias.reshape(c_out, 1))

    if m_pad != m:
        out = out[:, :, :m]                           # only on the rare pad path
    return out.reshape(n, c_out, h2, w2)              # already NCHW


def focus_reference(x_nchw, conv_w, gamma, beta, run_mean, run_var, eps=1e-5):
    """Pure-JAX reference mirroring the PyTorch forward (eval-mode BN)."""
    n, c, h, w = x_nchw.shape
    blocks = []
    for kh in (0, 1):
        for kw in (0, 1):
            blocks.append(x_nchw[:, :, kh::2, kw::2])
    y = jnp.concatenate(blocks, axis=1)               # (N, 4C, H/2, W/2)
    z = jnp.einsum('ncij,oc->noij', y, conv_w.reshape(conv_w.shape[0], 4 * c))
    scale = gamma / jnp.sqrt(run_var + eps)
    bias = beta - run_mean * scale
    z = z * scale[None, :, None, None] + bias[None, :, None, None]
    return z * jax.nn.sigmoid(z)


if __name__ == "__main__":
    key = jax.random.PRNGKey(0)
    k1, k2, k3, k4, k5, k6 = jax.random.split(key, 6)

    c_in, c_out = 3, 32                 # Focus requires in_channels in {1, 3}
    x = jax.random.normal(k1, (2, c_in, 16, 16), dtype=jnp.float32)

    # deterministic synthetic parameters (shapes per nn.Conv2d / nn.BatchNorm2d)
    conv_w = 0.1 * jax.random.normal(k2, (c_out, 4 * c_in, 1, 1), dtype=jnp.float32)
    gamma = 1.0 + 0.1 * jax.random.normal(k3, (c_out,), dtype=jnp.float32)
    beta = 0.1 * jax.random.normal(k4, (c_out,), dtype=jnp.float32)
    run_mean = 0.1 * jax.random.normal(k5, (c_out,), dtype=jnp.float32)
    run_var = jax.random.uniform(k6, (c_out,), dtype=jnp.float32,
                                 minval=0.5, maxval=1.5)

    fwd = jax.jit(focus_forward)

    # f32 path: exact check against the pure-JAX reference.
    out = jax.block_until_ready(fwd(x, conv_w, gamma, beta, run_mean, run_var))
    ref = focus_reference(x, conv_w, gamma, beta, run_mean, run_var)
    assert out.shape == (2, c_out, 8, 8), out.shape
    assert jnp.allclose(out, ref, atol=1e-5, rtol=1e-5), \
        float(jnp.max(jnp.abs(out - ref)))

    # bf16 I/O path (review item): ~2x less HBM traffic, f32 accumulate inside.
    x_bf16 = x.astype(jnp.bfloat16)
    out_bf = jax.block_until_ready(
        fwd(x_bf16, conv_w, gamma, beta, run_mean, run_var))
    ref_bf = focus_reference(x_bf16.astype(jnp.float32), conv_w, gamma, beta,
                             run_mean, run_var)
    assert out_bf.dtype == jnp.bfloat16
    assert out_bf.shape == (2, c_out, 8, 8)
    assert jnp.allclose(out_bf.astype(jnp.float32), ref_bf,
                        atol=0.1, rtol=0.1), \
        float(jnp.max(jnp.abs(out_bf.astype(jnp.float32) - ref_bf)))

    print("KERNEL_OK")
</pallas_src>

<mosaic_0001>
module attributes {stable_mosaic.version = 11 : i64} {
  func.func @_focus_kernel(%arg0: i32, %arg1: i32, %arg2: memref<1x12x64xf32, #tpu.memory_space<vmem>>, %arg3: memref<32x12xf32, #tpu.memory_space<vmem>>, %arg4: memref<32x1xf32, #tpu.memory_space<vmem>>, %arg5: memref<1x32x64xf32, #tpu.memory_space<vmem>>) attributes {dimension_semantics = [#tpu.dimension_semantics<parallel>, #tpu.dimension_semantics<parallel>], iteration_bounds = array<i64: 2, 1>, scalar_prefetch = 0 : i64, scratch_operands = 0 : i64, tpu.core_type = #tpu.core_type<tc>, window_params = [{transform_indices = @transform_0, window_bounds = array<i64: 1, 12, 64>}, {pipeline_mode = #tpu.pipeline_mode<synchronous>, transform_indices = @transform_1, window_bounds = array<i64: 32, 12>}, {pipeline_mode = #tpu.pipeline_mode<synchronous>, transform_indices = @transform_2, window_bounds = array<i64: 32, 1>}, {transform_indices = @transform_3, window_bounds = array<i64: 1, 32, 64>}]} {
    %c0 = arith.constant 0 : index
    %c0_0 = arith.constant 0 : index
    %0 = vector.load %arg3[%c0, %c0_0] : memref<32x12xf32, #tpu.memory_space<vmem>>, vector<32x12xf32>
    %c0_1 = arith.constant 0 : index
    %c0_2 = arith.constant 0 : index
    %c0_3 = arith.constant 0 : index
    %1 = vector.load %arg2[%c0_1, %c0_2, %c0_3] : memref<1x12x64xf32, #tpu.memory_space<vmem>>, vector<1x12x64xf32>
    %2 = vector.shape_cast %1 : vector<1x12x64xf32> to vector<12x64xf32>
    %cst = arith.constant dense<0.000000e+00> : vector<32x64xf32>
    %3 = tpu.matmul %0, %2, %cst {dimension_numbers = #tpu.dot_dimension_numbers<[1], [0], [0], [1], [0, 0, 1, 1], [], []>} : vector<32x12xf32>, vector<12x64xf32>, vector<32x64xf32> -> vector<32x64xf32>
    %c0_4 = arith.constant 0 : index
    %c0_5 = arith.constant 0 : index
    %4 = vector.load %arg4[%c0_4, %c0_5] : memref<32x1xf32, #tpu.memory_space<vmem>>, vector<32x1xf32>
    %5 = vector.broadcast %4 : vector<32x1xf32> to vector<32x64xf32>
    %6 = arith.addf %3, %5 : vector<32x64xf32>
    %cst_6 = arith.constant 5.000000e-01 : f32
    %7 = vector.broadcast %cst_6 : f32 to vector<32x64xf32>
    %8 = arith.mulf %7, %6 : vector<32x64xf32>
    %cst_7 = arith.constant 5.000000e-01 : f32
    %9 = vector.broadcast %cst_7 : f32 to vector<32x64xf32>
    %10 = arith.mulf %9, %6 : vector<32x64xf32>
    %11 = math.tanh %10 : vector<32x64xf32>
    %cst_8 = arith.constant 1.000000e+00 : f32
    %12 = vector.broadcast %cst_8 : f32 to vector<32x64xf32>
    %13 = arith.addf %11, %12 : vector<32x64xf32>
    %14 = arith.mulf %8, %13 : vector<32x64xf32>
    %c0_9 = arith.constant 0 : index
    %c0_10 = arith.constant 0 : index
    %c0_11 = arith.constant 0 : index
    %15 = vector.load %arg5[%c0_9, %c0_10, %c0_11] : memref<1x32x64xf32, #tpu.memory_space<vmem>>, vector<1x32x64xf32>
    %16 = vector.shape_cast %15 : vector<1x32x64xf32> to vector<32x64xf32>
    %17 = vector.shape_cast %14 : vector<32x64xf32> to vector<1x32x64xf32>
    tpu.vector_store %arg5[%c0_9, %c0_10, %c0_11], %17 {strides = array<i32>} : memref<1x32x64xf32, #tpu.memory_space<vmem>>, vector<1x32x64xf32>,
    return
  }
  func.func @transform_0(%arg0: i32, %arg1: i32) -> (i32, i32, i32) {
    %c0_i32 = arith.constant 0 : i32
    %c0_i32_0 = arith.constant 0 : i32
    return %arg0, %c0_i32, %arg1 : i32, i32, i32
  }
  func.func @transform_1(%arg0: i32, %arg1: i32) -> (i32, i32) {
    %c0_i32 = arith.constant 0 : i32
    %c0_i32_0 = arith.constant 0 : i32
    %c0_i32_1 = arith.constant 0 : i32
    return %c0_i32, %c0_i32_0 : i32, i32
  }
  func.func @transform_2(%arg0: i32, %arg1: i32) -> (i32, i32) {
    %c0_i32 = arith.constant 0 : i32
    %c0_i32_0 = arith.constant 0 : i32
    %c0_i32_1 = arith.constant 0 : i32
    return %c0_i32, %c0_i32_0 : i32, i32
  }
  func.func @transform_3(%arg0: i32, %arg1: i32) -> (i32, i32, i32) {
    %c0_i32 = arith.constant 0 : i32
    %c0_i32_0 = arith.constant 0 : i32
    return %arg0, %c0_i32, %arg1 : i32, i32, i32
  }
}

</mosaic_0001>

<bundles_post_ra>
// kernel: focus_forward.1
= control target key start
LH: loop header
LB: loop body
LE: loop exit
PB: predicated region body
PF: predicated region fallthrough
CT: control target
= control target key end

     0   :  { %s556_s12 = smov 0   ;;  %s558_s13 = smov 0   ;;  %s621_s0 = inlined_call_operand.vmem [shape: f32[2,12,64], index: 0, kind: input, shape index: {}]   ;;  %s622_s1 = inlined_call_operand.vmem [shape: f32[32,12], index: 1, kind: input, shape index: {}]   ;;  %s623_s2 = inlined_call_operand.vmem [shape: f32[32,1], index: 2, kind: input, shape index: {}]   ;;  %s624_s3 = inlined_call_operand.vmem [shape: f32[2,32,64], index: 3, kind: output, shape index: {}]  }
   0x1   :  { %s560_s14 = smov 0  }
   0x2 LB: > { %s25_s15 = sadd.s32 1, %s529_s13  ;;  %p442_p0 = scmp.ge.s32.totalorder %s533_s14, 1  ;;  %s533_s14 = sphi %s560_s14, %s13_s14   ;;  %s529_s13 = sphi %s558_s13, %s626_s13   ;;  %s525_s12 = sphi %s556_s12, %s625_s12  }
   0x3   : > { %p27_p1 = scmp.ge.s32.totalorder %s25_s15, 2  ;;  %p156_p2 = scmp.lt.s32.totalorder %s533_s14, 3 }
   0x5   : > { %s628_s15 = smov (%p27_p1, %s25_s15), 0  ;;  %p157_p3 = pnand %p442_p0, %p156_p2 }
   0x6   : > { %p186_p4 = scmp.lt.s32.totalorder (!%p157_p3), %s525_s12, 1 }
   0x7   : > { %160 = sbr.rel (%p157_p3) target bundleno = 239 (0xef), region = 32 }
   0xc   : > { %v202_v0 = vld [vmem:[%s622_s1] sm:$0xff]  ;;  %vm232_vm0 = vcmask 97280   ;;  %v204_v1 = vld [vmem:[%s622_s1 + $0x10] sm:$0xff]  ;;  %s630_s12 = smov (!%p186_p4, %s525_s12), 1  ;;  %v535_v4 = vmov 0   ;;  %vm245_vm1 = vcmask 1043456  }
   0xd   : > { %466 = vmatprep.mubr.msk.f32.mxu0 %vm232_vm0, %v202_v0  ;;  %469 = vmatprep.mubr.msk.f32.mxu1 %vm232_vm0, %v204_v1  ;;  %v210_v2 = vld [vmem:[%s623_s2 + $0x10] sm:$0xff]  ;;  %v208_v3 = vld [vmem:[%s623_s2] sm:$0xff]  ;;  %s454_s24 = sshll.u32 %s630_s12, 4  ;;  %v203_v7 = vld [vmem:[%s622_s1 + $0x8] sm:$0xff]  ;;  %s455_s9 = sshll.u32 %s630_s12, 5  ;;  %vm350_vm2 = vcmask 523264  }
   0xe   : > { %502 = vset.pattern.permute.xlu1 %v535_v4  ;;  %501 = vset.pattern.permute.xlu0 %v535_v4  ;;  %s193_s27 = scalar_lea.vmem %s621_s0, %s454_s24  ;;  %v205_v8 = vld [vmem:[%s622_s1 + $0x18] sm:$0xff]  ;;  %v209_v10 = vld [vmem:[%s623_s2 + $0x8] sm:$0xff]  ;;  %s201_s16 = scalar_lea.vmem %s624_s3, %s455_s9 }
   0xf   : > { %224 = vperm.xlu1 %502, %v210_v2   ;;  %214 = vperm.xlu0 %501, %v208_v3   ;;  %v207_v5 = vld [vmem:[%s193_s27 + $0x8] sm:$0xf]  ;;  %v206_v6 = vld [vmem:[%s193_s27] sm:$0xff]  ;;  %v211_v9 = vld [vmem:[%s623_s2 + $0x18] sm:$0xff] }
  0x10   : > { %462 = vmatprep.subr.msk.mxu0 %vm245_vm1, %v207_v5  ;;  %472 = vmatprep.subr.msk.mxu1 %vm245_vm1, %v207_v5 }
  0x11   : > { %463 = vmatpush3.msk.msra.mxu0 %vm245_vm1, %v207_v5  ;;  %474 = vmatpush3.msk.msra.mxu1 %vm245_vm1, %v207_v5 }
  0x12   : > { %464 = vmatprep.subr.mxu0 %v206_v6  ;;  %473 = vmatprep.subr.mxu1 %v206_v6 }
  0x13   : > { %465 = vmatpush3.msra.mxu0 %v206_v6  ;;  %475 = vmatpush3.msra.mxu1 %v206_v6 }
  0x14   : > { %467 = vmatmul.mubr.msk.f32.vlgmr.msra.gmra.mxu0 %vm232_vm0, %v203_v7  ;;  %470 = vmatmul.mubr.msk.f32.vlgmr.msra.gmra.mxu1 %vm232_vm0, %v205_v8 }
  0x15   : > { %229 = vperm.xlu1 %502, %v211_v9   ;;  %219 = vperm.xlu0 %501, %v209_v10  }
  0x8a   : > { %v225_v11 = vpop.permute.xlu1 %224  ;;  %v215_v12 = vpop.permute.xlu0 %214 }
  0x90   : > { %v230_v13 = vpop.permute.xlu1 %229  ;;  %v220_v14 = vpop.permute.xlu0 %219 }
  0xd4   : > { %v468_v15 = vpop.f32.mrf.mxu0  ;;  %v471_v16 = vpop.f32.mrf.mxu1 }
  0xd5   : > { %v321_v17 = vadd.f32 %v468_v15, %v220_v14  ;;  %v331_v18 = vadd.f32 %v471_v16, %v230_v13 }
  0xd6   : > { %v315_v19 = vpop.f32.mrf.mxu0  ;;  %v325_v20 = vpop.f32.mrf.mxu1 }
  0xd7   : > { %v335_v21 = vmul.f32 0.5, %v321_v17  ;;  %v337_v22 = vmul.f32 0.5, %v331_v18  ;;  %v316_v23 = vadd.f32 %v315_v19, %v215_v12  ;;  %v326_v24 = vadd.f32 %v325_v20, %v225_v11 }
  0xd9   : > { %503 = vtanh.f32 %v335_v21  ;;  %v334_v25 = vmul.f32 0.5, %v316_v23  ;;  %v336_v26 = vmul.f32 0.5, %v326_v24 }
  0xda   : > { %505 = vtanh.f32 %v337_v22 }
  0xdb   : > { %507 = vtanh.f32 %v334_v25 }
  0xdc   : > { %509 = vtanh.f32 %v336_v26 }
  0xe6   : > { %v504_v27 = vpop.eup %503 }
  0xe7   : > { %v506_v28 = vpop.eup %505  ;;  %v343_v29 = vadd.f32 1.0, %v504_v27 }
  0xe8   : > { %v508_v30 = vpop.eup %507  ;;  %v345_v31 = vadd.f32 1.0, %v506_v28 }
  0xe9   : > { %v510_v32 = vpop.eup %509  ;;  %v347_v33 = vmul.f32 %v343_v29, %v335_v21  ;;  %v342_v34 = vadd.f32 1.0, %v508_v30 }
  0xea   : > { %v349_v35 = vmul.f32 %v345_v31, %v337_v22  ;;  %v344_v36 = vadd.f32 1.0, %v510_v32 }
  0xeb   : > { %352 = vst.msk [vmem:[%s201_s16 + $0x8] sm:$0xff] %vm350_vm2, %v347_v33  ;;  %v346_v37 = vmul.f32 %v342_v34, %v334_v25 }
  0xec   : > { %354 = vst.msk [vmem:[%s201_s16 + $0x18] sm:$0xff] %vm350_vm2, %v349_v35  ;;  %v348_v38 = vmul.f32 %v344_v36, %v336_v26 }
  0xed   : > { %351 = vst.msk [vmem:[%s201_s16] sm:$0xff] %vm350_vm2, %v346_v37 }
  0xee   : > { %353 = vst.msk [vmem:[%s201_s16 + $0x10] sm:$0xff] %vm350_vm2, %v348_v38 }
  0xef PF: > { %s13_s14 = sadd.s32 1, %s533_s14   ;;  %s625_s12 = smov %s529_s13 }
  0xf0   : > { %p10_p5 = scmp.ge.s32.totalorder %s13_s14, 4   ;;  %s626_s13 = smov %s628_s15 }
  0xf2   :  { %12 = sbr.rel (!%p10_p5) target bundleno = 2 (0x2), region = 62 }

</bundles_post_ra>
